<compile_context>
chip_gen: v5e
topology: v5e:2x2
jax: 0.10.0
libtpu: 0.0.40
codegen_flags: <defaults>
</compile_context>

<pallas_src>
import math
import numpy as np
import jax
import jax.numpy as jnp
from jax import lax
from jax.experimental import pallas as pl
from jax.experimental.pallas import tpu as pltpu


def _shift_rows(v, off, row_idx):
    """w[s] = v[s + off] (shift along the sublane axis); zero where s+off is
    outside [0, S). `off` is a static python int."""
    if off == 0:
        return v
    S = v.shape[0]
    rolled = pltpu.roll(v, shift=(-off) % S, axis=0)        # rolled[s] = v[(s + off) % S]
    valid = jnp.logical_and(row_idx + off >= 0, row_idx + off < S)   # (S, 1)
    return jnp.where(valid, rolled, jnp.zeros_like(rolled))


def encoder_kernel(x_ref, mask_ref, wkT_ref, wvT_ref, wfcT_ref, bfc_ref,
                   w1t_ref, b1_ref, w2t_ref, b2_ref, out_ref):
    x = x_ref[...]                                  # (S, D) f32, shared by all layers
    S, D = x.shape
    L = wkT_ref.shape[0]
    DI = w1t_ref.shape[2]
    mask = mask_ref[...]                            # (S, 1) f32
    x_bf = x.astype(jnp.bfloat16)                   # hoisted: shared by both layers
    row_idx = lax.broadcasted_iota(jnp.int32, (S, 1), 0)

    pieces = []
    for l in range(L):      # layers are independent in the source -> unrolled & interleaved
        # ---- MultiHeadAttention (literal source: softmax(x @ W_K^T / sqrt(d_model)) @ W_V^T) ----
        # 1/sqrt(d_model) is folded into wkT on the host.
        qk = jnp.dot(x_bf, wkT_ref[l], preferred_element_type=jnp.float32)       # (S, A)
        qk = qk - jnp.max(qk, axis=-1, keepdims=True)
        e = jnp.exp(qk)
        p = e * pl.reciprocal(jnp.sum(e, axis=-1, keepdims=True), approx=True)   # softmax(dim=-1)
        # TODO(synk): torch.dropout(qk, 0.1, True) is stochastic; treated as identity.
        o = jnp.dot(p.astype(jnp.bfloat16), wvT_ref[l],
                    preferred_element_type=jnp.float32)                          # (S, A)
        # TODO(synk): MHA's .view(...).transpose(1, 4) is invalid for 3-D inputs;
        #             treated as the identity reshape to (1, S, n_heads*d_v).
        y = jnp.dot(o.astype(jnp.bfloat16), wfcT_ref[l],
                    preferred_element_type=jnp.float32) + bfc_ref[l]             # (S, D)
        y = y * mask                                # enc_output *= non_pad_mask

        # ---- Positionwise FFN: Conv1d(k=5, pad=2) -> ReLU -> Conv1d(k=3, pad=1) ----
        # TODO(synk): original w_1 has no padding, which makes the residual add
        #             shape-incompatible; 'same' padding (pad=2) used instead.
        h = jnp.zeros((S, DI), jnp.float32)
        for k in range(5):                          # tap-sum im2col: 5 tiny K=D matmuls
            tap = _shift_rows(y, k - 2, row_idx)
            h = h + jnp.dot(tap.astype(jnp.bfloat16), w1t_ref[l * 5 + k],
                            preferred_element_type=jnp.float32)
        h = jnp.maximum(h + b1_ref[l], 0.0)

        f = jnp.zeros((S, D), jnp.float32)
        for k in range(3):
            tap = _shift_rows(h, k - 1, row_idx)
            f = f + jnp.dot(tap.astype(jnp.bfloat16), w2t_ref[l * 3 + k],
                            preferred_element_type=jnp.float32)
        f = f + b2_ref[l]
        # TODO(synk): nn.Dropout(0.1) after w_2 treated as identity (deterministic run).

        out = (f + y) * mask                        # residual, then *= non_pad_mask
        pieces += [out, p]

    # Single lane-dense store: [out_0 | attn_0 | out_1 | attn_1] -> (S, L*(D+A)) = (16, 128).
    out_ref[...] = jnp.concatenate(pieces, axis=-1)


@jax.jit
def run_encoder(x2, mask2, stacked):
    """One fused pallas_call; all layers unrolled inside a single grid step."""
    S, D = x2.shape
    L, _, A = stacked["wkT"].shape
    combined = pl.pallas_call(
        encoder_kernel,
        out_shape=jax.ShapeDtypeStruct((S, L * (D + A)), jnp.float32),
    )(x2, mask2, stacked["wkT"], stacked["wvT"], stacked["wfcT"], stacked["bfc"],
      stacked["w1t"], stacked["b1"], stacked["w2t"], stacked["b2"])
    outs, attns = [], []
    for l in range(L):
        base = l * (D + A)
        outs.append(combined[:, base:base + D])
        attns.append(combined[:, base + D:base + D + A])
    return outs, attns


def transformer_encoder(enc_inputs, non_pad_mask, stacked):
    B, S, D = enc_inputs.shape
    x2 = enc_inputs.reshape(B * S, D)               # qa.view(-1, *qa.shape[2:])
    mask2 = non_pad_mask.reshape(B * S, 1)
    outs, attns = run_encoder(x2, mask2, stacked)
    L = len(outs)
    # NOTE: matches PyTorch exactly — every layer consumes the ORIGINAL enc_inputs,
    #       only the last layer's enc_output is returned.
    enc_output = outs[L - 1].reshape(1, B * S, D)
    attn_list = [attns[l].reshape(1, B * S, -1) for l in range(L)]
    return enc_output, attn_list


def init_params(key, n_layers=2, d_model=32, d_k=16, d_v=16, d_inner=16, n_heads=2):
    """Per-layer raw params (for the reference) + stacked/pre-transformed kernel params."""
    layers = []
    for _ in range(n_layers):
        key, *ks = jax.random.split(key, 9)

        def u(k, shape, fan_in):
            bound = 1.0 / math.sqrt(fan_in)
            return jax.random.uniform(k, shape, jnp.float32, -bound, bound)

        wk = u(ks[0], (n_heads * d_k, d_model), d_model)
        wv = u(ks[1], (n_heads * d_v, d_model), d_model)
        wfc = u(ks[2], (d_model, n_heads * d_v), n_heads * d_v)
        bfc = u(ks[3], (1, d_model), n_heads * d_v)
        w1 = u(ks[4], (d_inner, d_model, 5), d_model * 5)     # Conv1d OIK
        b1 = u(ks[5], (1, d_inner), d_model * 5)
        w2 = u(ks[6], (d_model, d_inner, 3), d_inner * 3)     # Conv1d OIK
        b2 = u(ks[7], (1, d_model), d_inner * 3)
        layers.append(dict(wk=wk, wv=wv, wfc=wfc, bfc=bfc,
                           w1=w1, b1=b1, w2=w2, b2=b2))

    scale = 1.0 / math.sqrt(d_model)              # W_Q.weight.size(-1) == d_model
    stacked = dict(
        # matmul weights pre-transposed + pre-cast to bf16 (MXU operands, f32 accum)
        wkT=jnp.stack([(lp["wk"] * scale).T for lp in layers]).astype(jnp.bfloat16),   # (L, D, A)
        wvT=jnp.stack([lp["wv"].T for lp in layers]).astype(jnp.bfloat16),             # (L, D, A)
        wfcT=jnp.stack([lp["wfc"].T for lp in layers]).astype(jnp.bfloat16),           # (L, A, D)
        bfc=jnp.stack([lp["bfc"] for lp in layers]),                                   # (L, 1, D) f32
        # per-tap conv weights, flattened leading (L*K) axis for simple static indexing
        w1t=jnp.concatenate([jnp.stack([lp["w1"][:, :, k].T for k in range(5)], axis=0)
                             for lp in layers], axis=0).astype(jnp.bfloat16),          # (L*5, D, DI)
        b1=jnp.stack([lp["b1"] for lp in layers]),                                     # (L, 1, DI) f32
        w2t=jnp.concatenate([jnp.stack([lp["w2"][:, :, k].T for k in range(3)], axis=0)
                             for lp in layers], axis=0).astype(jnp.bfloat16),          # (L*3, DI, D)
        b2=jnp.stack([lp["b2"] for lp in layers]),                                     # (L, 1, D) f32
    )
    return layers, stacked


def ref_encoder_layer(x2, mask2, lp):
    """Plain-JAX full-precision reference for the per-layer compute (sanity check)."""
    D = x2.shape[1]
    qk = (x2 @ lp["wk"].T) / math.sqrt(D)
    p = jax.nn.softmax(qk, axis=-1)
    o = p @ lp["wv"].T
    y = (o @ lp["wfc"].T + lp["bfc"]) * mask2
    inp = y.T[None]                              # (1, C=D, S)
    h = lax.conv_general_dilated(inp, lp["w1"], (1,), [(2, 2)],
                                 dimension_numbers=("NCH", "OIH", "NCH"))
    h = jnp.maximum(h + lp["b1"].T[None], 0.0)
    f = lax.conv_general_dilated(h, lp["w2"], (1,), [(1, 1)],
                                 dimension_numbers=("NCH", "OIH", "NCH"))
    f = f + lp["b2"].T[None]
    out = (f[0].T + y) * mask2
    return out, p


if __name__ == "__main__":
    key = jax.random.PRNGKey(0)
    B, S, d_model = 1, 16, 32
    k_in, k_par = jax.random.split(key)
    enc_inputs = jax.random.uniform(k_in, (B, S, d_model), jnp.float32)
    non_pad_mask = jnp.ones((B, S, 1), jnp.float32)
    layers, stacked = init_params(k_par)

    enc_output, attn_list = transformer_encoder(enc_inputs, non_pad_mask, stacked)
    enc_output = jax.block_until_ready(enc_output)
    assert enc_output.shape == (1, B * S, d_model)
    assert len(attn_list) == 2

    # sanity check against a plain-JAX (f32) reference
    x2 = enc_inputs.reshape(B * S, d_model)
    mask2 = non_pad_mask.reshape(B * S, 1)
    ref_out = None
    for li, lp in enumerate(layers):
        ref_out, ref_attn = ref_encoder_layer(x2, mask2, lp)
        assert np.allclose(np.asarray(attn_list[li][0]), np.asarray(ref_attn),
                           atol=2e-2, rtol=2e-2), "attn mismatch vs reference"
    assert np.allclose(np.asarray(enc_output[0]), np.asarray(ref_out),
                       atol=2e-2, rtol=2e-2), "mismatch vs reference"

    print("KERNEL_OK")
</pallas_src>

<mosaic_0001>
module attributes {stable_mosaic.version = 11 : i64} {
  func.func @encoder_kernel(%arg0: memref<16x32xf32, #tpu.memory_space<vmem>>, %arg1: memref<16x1xf32, #tpu.memory_space<vmem>>, %arg2: memref<2x32x32xbf16, #tpu.memory_space<vmem>>, %arg3: memref<2x32x32xbf16, #tpu.memory_space<vmem>>, %arg4: memref<2x32x32xbf16, #tpu.memory_space<vmem>>, %arg5: memref<2x1x32xf32, #tpu.memory_space<vmem>>, %arg6: memref<10x32x16xbf16, #tpu.memory_space<vmem>>, %arg7: memref<2x1x16xf32, #tpu.memory_space<vmem>>, %arg8: memref<6x16x32xbf16, #tpu.memory_space<vmem>>, %arg9: memref<2x1x32xf32, #tpu.memory_space<vmem>>, %arg10: memref<16x128xf32, #tpu.memory_space<vmem>>) attributes {dimension_semantics = [], scalar_prefetch = 0 : i64, scratch_operands = 0 : i64, tpu.core_type = #tpu.core_type<tc>} {
    %c0 = arith.constant 0 : index
    %c0_0 = arith.constant 0 : index
    %0 = vector.load %arg0[%c0, %c0_0] : memref<16x32xf32, #tpu.memory_space<vmem>>, vector<16x32xf32>
    %c0_1 = arith.constant 0 : index
    %c0_2 = arith.constant 0 : index
    %1 = vector.load %arg1[%c0_1, %c0_2] : memref<16x1xf32, #tpu.memory_space<vmem>>, vector<16x1xf32>
    %2 = arith.truncf %0 : vector<16x32xf32> to vector<16x32xbf16>
    %3 = tpu.iota {dimensions = array<i32: 0>} : vector<16x1xi32>
    %c0_3 = arith.constant 0 : index
    %c0_4 = arith.constant 0 : index
    %c0_5 = arith.constant 0 : index
    %4 = vector.load %arg2[%c0_3, %c0_4, %c0_5] : memref<2x32x32xbf16, #tpu.memory_space<vmem>>, vector<1x32x32xbf16>
    %5 = vector.shape_cast %4 : vector<1x32x32xbf16> to vector<32x32xbf16>
    %cst = arith.constant dense<0.000000e+00> : vector<16x32xf32>
    %6 = tpu.matmul %2, %5, %cst {dimension_numbers = #tpu.dot_dimension_numbers<[1], [0], [0], [1], [0, 0, 1, 1], [], []>} : vector<16x32xbf16>, vector<32x32xbf16>, vector<16x32xf32> -> vector<16x32xf32>
    %cst_6 = arith.constant dense<0xFF800000> : vector<16xf32>
    %7 = vector.multi_reduction <maximumf>, %6, %cst_6 [1] : vector<16x32xf32> to vector<16xf32>
    %8 = vector.shape_cast %7 : vector<16xf32> to vector<16x1xf32>
    %9 = vector.broadcast %8 : vector<16x1xf32> to vector<16x32xf32>
    %10 = arith.subf %6, %9 : vector<16x32xf32>
    %11 = math.exp %10 : vector<16x32xf32>
    %cst_7 = arith.constant dense<0.000000e+00> : vector<16xf32>
    %12 = vector.multi_reduction <add>, %11, %cst_7 [1] : vector<16x32xf32> to vector<16xf32>
    %13 = vector.shape_cast %12 : vector<16xf32> to vector<16x1xf32>
    %14 = tpu.reciprocal %13 {approx = true} : vector<16x1xf32> -> vector<16x1xf32>
    %15 = vector.broadcast %14 : vector<16x1xf32> to vector<16x32xf32>
    %16 = arith.mulf %11, %15 : vector<16x32xf32>
    %17 = arith.truncf %16 : vector<16x32xf32> to vector<16x32xbf16>
    %c0_8 = arith.constant 0 : index
    %c0_9 = arith.constant 0 : index
    %c0_10 = arith.constant 0 : index
    %18 = vector.load %arg3[%c0_8, %c0_9, %c0_10] : memref<2x32x32xbf16, #tpu.memory_space<vmem>>, vector<1x32x32xbf16>
    %19 = vector.shape_cast %18 : vector<1x32x32xbf16> to vector<32x32xbf16>
    %cst_11 = arith.constant dense<0.000000e+00> : vector<16x32xf32>
    %20 = tpu.matmul %17, %19, %cst_11 {dimension_numbers = #tpu.dot_dimension_numbers<[1], [0], [0], [1], [0, 0, 1, 1], [], []>} : vector<16x32xbf16>, vector<32x32xbf16>, vector<16x32xf32> -> vector<16x32xf32>
    %21 = arith.truncf %20 : vector<16x32xf32> to vector<16x32xbf16>
    %c0_12 = arith.constant 0 : index
    %c0_13 = arith.constant 0 : index
    %c0_14 = arith.constant 0 : index
    %22 = vector.load %arg4[%c0_12, %c0_13, %c0_14] : memref<2x32x32xbf16, #tpu.memory_space<vmem>>, vector<1x32x32xbf16>
    %23 = vector.shape_cast %22 : vector<1x32x32xbf16> to vector<32x32xbf16>
    %cst_15 = arith.constant dense<0.000000e+00> : vector<16x32xf32>
    %24 = tpu.matmul %21, %23, %cst_15 {dimension_numbers = #tpu.dot_dimension_numbers<[1], [0], [0], [1], [0, 0, 1, 1], [], []>} : vector<16x32xbf16>, vector<32x32xbf16>, vector<16x32xf32> -> vector<16x32xf32>
    %c0_16 = arith.constant 0 : index
    %c0_17 = arith.constant 0 : index
    %c0_18 = arith.constant 0 : index
    %25 = vector.load %arg5[%c0_16, %c0_17, %c0_18] : memref<2x1x32xf32, #tpu.memory_space<vmem>>, vector<1x1x32xf32>
    %26 = vector.shape_cast %25 : vector<1x1x32xf32> to vector<1x32xf32>
    %27 = vector.broadcast %26 : vector<1x32xf32> to vector<16x32xf32>
    %28 = arith.addf %24, %27 : vector<16x32xf32>
    %29 = vector.broadcast %1 : vector<16x1xf32> to vector<16x32xf32>
    %30 = arith.mulf %28, %29 : vector<16x32xf32>
    %cst_19 = arith.constant 0.000000e+00 : f32
    %31 = vector.broadcast %cst_19 : f32 to vector<16x16xf32>
    %c2_i32 = arith.constant 2 : i32
    %32 = tpu.dynamic_rotate %30 by %c2_i32 dim 0 : vector<16x32xf32>, i32 -> vector<16x32xf32>
    %c-2_i32 = arith.constant -2 : i32
    %33 = vector.broadcast %c-2_i32 : i32 to vector<16x1xi32>
    %34 = arith.addi %3, %33 : vector<16x1xi32>
    %c0_i32 = arith.constant 0 : i32
    %35 = vector.broadcast %c0_i32 : i32 to vector<16x1xi32>
    %36 = arith.cmpi sge, %34, %35 : vector<16x1xi32>
    %c-2_i32_20 = arith.constant -2 : i32
    %37 = vector.broadcast %c-2_i32_20 : i32 to vector<16x1xi32>
    %38 = arith.addi %3, %37 : vector<16x1xi32>
    %c16_i32 = arith.constant 16 : i32
    %39 = vector.broadcast %c16_i32 : i32 to vector<16x1xi32>
    %40 = arith.cmpi slt, %38, %39 : vector<16x1xi32>
    %41 = arith.andi %36, %40 : vector<16x1xi1>
    %cst_21 = arith.constant 0.000000e+00 : f32
    %42 = vector.broadcast %cst_21 : f32 to vector<16x32xf32>
    %43 = vector.shape_cast %41 : vector<16x1xi1> to vector<16x1xi1>
    %44 = vector.broadcast %43 : vector<16x1xi1> to vector<16x32xi1>
    %45 = arith.select %44, %32, %42 : vector<16x32xi1>, vector<16x32xf32>
    %46 = arith.truncf %45 : vector<16x32xf32> to vector<16x32xbf16>
    %c0_22 = arith.constant 0 : index
    %c0_23 = arith.constant 0 : index
    %c0_24 = arith.constant 0 : index
    %47 = vector.load %arg6[%c0_22, %c0_23, %c0_24] : memref<10x32x16xbf16, #tpu.memory_space<vmem>>, vector<1x32x16xbf16>
    %48 = vector.shape_cast %47 : vector<1x32x16xbf16> to vector<32x16xbf16>
    %cst_25 = arith.constant dense<0.000000e+00> : vector<16x16xf32>
    %49 = tpu.matmul %46, %48, %cst_25 {dimension_numbers = #tpu.dot_dimension_numbers<[1], [0], [0], [1], [0, 0, 1, 1], [], []>} : vector<16x32xbf16>, vector<32x16xbf16>, vector<16x16xf32> -> vector<16x16xf32>
    %50 = arith.addf %31, %49 : vector<16x16xf32>
    %c1_i32 = arith.constant 1 : i32
    %51 = tpu.dynamic_rotate %30 by %c1_i32 dim 0 : vector<16x32xf32>, i32 -> vector<16x32xf32>
    %c-1_i32 = arith.constant -1 : i32
    %52 = vector.broadcast %c-1_i32 : i32 to vector<16x1xi32>
    %53 = arith.addi %3, %52 : vector<16x1xi32>
    %c0_i32_26 = arith.constant 0 : i32
    %54 = vector.broadcast %c0_i32_26 : i32 to vector<16x1xi32>
    %55 = arith.cmpi sge, %53, %54 : vector<16x1xi32>
    %c-1_i32_27 = arith.constant -1 : i32
    %56 = vector.broadcast %c-1_i32_27 : i32 to vector<16x1xi32>
    %57 = arith.addi %3, %56 : vector<16x1xi32>
    %c16_i32_28 = arith.constant 16 : i32
    %58 = vector.broadcast %c16_i32_28 : i32 to vector<16x1xi32>
    %59 = arith.cmpi slt, %57, %58 : vector<16x1xi32>
    %60 = arith.andi %55, %59 : vector<16x1xi1>
    %cst_29 = arith.constant 0.000000e+00 : f32
    %61 = vector.broadcast %cst_29 : f32 to vector<16x32xf32>
    %62 = vector.shape_cast %60 : vector<16x1xi1> to vector<16x1xi1>
    %63 = vector.broadcast %62 : vector<16x1xi1> to vector<16x32xi1>
    %64 = arith.select %63, %51, %61 : vector<16x32xi1>, vector<16x32xf32>
    %65 = arith.truncf %64 : vector<16x32xf32> to vector<16x32xbf16>
    %c1 = arith.constant 1 : index
    %c0_30 = arith.constant 0 : index
    %c0_31 = arith.constant 0 : index
    %66 = vector.load %arg6[%c1, %c0_30, %c0_31] : memref<10x32x16xbf16, #tpu.memory_space<vmem>>, vector<1x32x16xbf16>
    %67 = vector.shape_cast %66 : vector<1x32x16xbf16> to vector<32x16xbf16>
    %cst_32 = arith.constant dense<0.000000e+00> : vector<16x16xf32>
    %68 = tpu.matmul %65, %67, %cst_32 {dimension_numbers = #tpu.dot_dimension_numbers<[1], [0], [0], [1], [0, 0, 1, 1], [], []>} : vector<16x32xbf16>, vector<32x16xbf16>, vector<16x16xf32> -> vector<16x16xf32>
    %69 = arith.addf %50, %68 : vector<16x16xf32>
    %70 = arith.truncf %30 : vector<16x32xf32> to vector<16x32xbf16>
    %c2 = arith.constant 2 : index
    %c0_33 = arith.constant 0 : index
    %c0_34 = arith.constant 0 : index
    %71 = vector.load %arg6[%c2, %c0_33, %c0_34] : memref<10x32x16xbf16, #tpu.memory_space<vmem>>, vector<1x32x16xbf16>
    %72 = vector.shape_cast %71 : vector<1x32x16xbf16> to vector<32x16xbf16>
    %cst_35 = arith.constant dense<0.000000e+00> : vector<16x16xf32>
    %73 = tpu.matmul %70, %72, %cst_35 {dimension_numbers = #tpu.dot_dimension_numbers<[1], [0], [0], [1], [0, 0, 1, 1], [], []>} : vector<16x32xbf16>, vector<32x16xbf16>, vector<16x16xf32> -> vector<16x16xf32>
    %74 = arith.addf %69, %73 : vector<16x16xf32>
    %c15_i32 = arith.constant 15 : i32
    %75 = tpu.dynamic_rotate %30 by %c15_i32 dim 0 : vector<16x32xf32>, i32 -> vector<16x32xf32>
    %c1_i32_36 = arith.constant 1 : i32
    %76 = vector.broadcast %c1_i32_36 : i32 to vector<16x1xi32>
    %77 = arith.addi %3, %76 : vector<16x1xi32>
    %c0_i32_37 = arith.constant 0 : i32
    %78 = vector.broadcast %c0_i32_37 : i32 to vector<16x1xi32>
    %79 = arith.cmpi sge, %77, %78 : vector<16x1xi32>
    %c1_i32_38 = arith.constant 1 : i32
    %80 = vector.broadcast %c1_i32_38 : i32 to vector<16x1xi32>
    %81 = arith.addi %3, %80 : vector<16x1xi32>
    %c16_i32_39 = arith.constant 16 : i32
    %82 = vector.broadcast %c16_i32_39 : i32 to vector<16x1xi32>
    %83 = arith.cmpi slt, %81, %82 : vector<16x1xi32>
    %84 = arith.andi %79, %83 : vector<16x1xi1>
    %cst_40 = arith.constant 0.000000e+00 : f32
    %85 = vector.broadcast %cst_40 : f32 to vector<16x32xf32>
    %86 = vector.shape_cast %84 : vector<16x1xi1> to vector<16x1xi1>
    %87 = vector.broadcast %86 : vector<16x1xi1> to vector<16x32xi1>
    %88 = arith.select %87, %75, %85 : vector<16x32xi1>, vector<16x32xf32>
    %89 = arith.truncf %88 : vector<16x32xf32> to vector<16x32xbf16>
    %c3 = arith.constant 3 : index
    %c0_41 = arith.constant 0 : index
    %c0_42 = arith.constant 0 : index
    %90 = vector.load %arg6[%c3, %c0_41, %c0_42] : memref<10x32x16xbf16, #tpu.memory_space<vmem>>, vector<1x32x16xbf16>
    %91 = vector.shape_cast %90 : vector<1x32x16xbf16> to vector<32x16xbf16>
    %cst_43 = arith.constant dense<0.000000e+00> : vector<16x16xf32>
    %92 = tpu.matmul %89, %91, %cst_43 {dimension_numbers = #tpu.dot_dimension_numbers<[1], [0], [0], [1], [0, 0, 1, 1], [], []>} : vector<16x32xbf16>, vector<32x16xbf16>, vector<16x16xf32> -> vector<16x16xf32>
    %93 = arith.addf %74, %92 : vector<16x16xf32>
    %c14_i32 = arith.constant 14 : i32
    %94 = tpu.dynamic_rotate %30 by %c14_i32 dim 0 : vector<16x32xf32>, i32 -> vector<16x32xf32>
    %c2_i32_44 = arith.constant 2 : i32
    %95 = vector.broadcast %c2_i32_44 : i32 to vector<16x1xi32>
    %96 = arith.addi %3, %95 : vector<16x1xi32>
    %c0_i32_45 = arith.constant 0 : i32
    %97 = vector.broadcast %c0_i32_45 : i32 to vector<16x1xi32>
    %98 = arith.cmpi sge, %96, %97 : vector<16x1xi32>
    %c2_i32_46 = arith.constant 2 : i32
    %99 = vector.broadcast %c2_i32_46 : i32 to vector<16x1xi32>
    %100 = arith.addi %3, %99 : vector<16x1xi32>
    %c16_i32_47 = arith.constant 16 : i32
    %101 = vector.broadcast %c16_i32_47 : i32 to vector<16x1xi32>
    %102 = arith.cmpi slt, %100, %101 : vector<16x1xi32>
    %103 = arith.andi %98, %102 : vector<16x1xi1>
    %cst_48 = arith.constant 0.000000e+00 : f32
    %104 = vector.broadcast %cst_48 : f32 to vector<16x32xf32>
    %105 = vector.shape_cast %103 : vector<16x1xi1> to vector<16x1xi1>
    %106 = vector.broadcast %105 : vector<16x1xi1> to vector<16x32xi1>
    %107 = arith.select %106, %94, %104 : vector<16x32xi1>, vector<16x32xf32>
    %108 = arith.truncf %107 : vector<16x32xf32> to vector<16x32xbf16>
    %c4 = arith.constant 4 : index
    %c0_49 = arith.constant 0 : index
    %c0_50 = arith.constant 0 : index
    %109 = vector.load %arg6[%c4, %c0_49, %c0_50] : memref<10x32x16xbf16, #tpu.memory_space<vmem>>, vector<1x32x16xbf16>
    %110 = vector.shape_cast %109 : vector<1x32x16xbf16> to vector<32x16xbf16>
    %cst_51 = arith.constant dense<0.000000e+00> : vector<16x16xf32>
    %111 = tpu.matmul %108, %110, %cst_51 {dimension_numbers = #tpu.dot_dimension_numbers<[1], [0], [0], [1], [0, 0, 1, 1], [], []>} : vector<16x32xbf16>, vector<32x16xbf16>, vector<16x16xf32> -> vector<16x16xf32>
    %112 = arith.addf %93, %111 : vector<16x16xf32>
    %c0_52 = arith.constant 0 : index
    %c0_53 = arith.constant 0 : index
    %c0_54 = arith.constant 0 : index
    %113 = vector.load %arg7[%c0_52, %c0_53, %c0_54] : memref<2x1x16xf32, #tpu.memory_space<vmem>>, vector<1x1x16xf32>
    %114 = vector.shape_cast %113 : vector<1x1x16xf32> to vector<1x16xf32>
    %115 = vector.broadcast %114 : vector<1x16xf32> to vector<16x16xf32>
    %116 = arith.addf %112, %115 : vector<16x16xf32>
    %cst_55 = arith.constant 0.000000e+00 : f32
    %117 = vector.broadcast %cst_55 : f32 to vector<16x16xf32>
    %118 = arith.maximumf %116, %117 : vector<16x16xf32>
    %cst_56 = arith.constant 0.000000e+00 : f32
    %119 = vector.broadcast %cst_56 : f32 to vector<16x32xf32>
    %c1_i32_57 = arith.constant 1 : i32
    %120 = tpu.dynamic_rotate %118 by %c1_i32_57 dim 0 : vector<16x16xf32>, i32 -> vector<16x16xf32>
    %c-1_i32_58 = arith.constant -1 : i32
    %121 = vector.broadcast %c-1_i32_58 : i32 to vector<16x1xi32>
    %122 = arith.addi %3, %121 : vector<16x1xi32>
    %c0_i32_59 = arith.constant 0 : i32
    %123 = vector.broadcast %c0_i32_59 : i32 to vector<16x1xi32>
    %124 = arith.cmpi sge, %122, %123 : vector<16x1xi32>
    %c-1_i32_60 = arith.constant -1 : i32
    %125 = vector.broadcast %c-1_i32_60 : i32 to vector<16x1xi32>
    %126 = arith.addi %3, %125 : vector<16x1xi32>
    %c16_i32_61 = arith.constant 16 : i32
    %127 = vector.broadcast %c16_i32_61 : i32 to vector<16x1xi32>
    %128 = arith.cmpi slt, %126, %127 : vector<16x1xi32>
    %129 = arith.andi %124, %128 : vector<16x1xi1>
    %cst_62 = arith.constant 0.000000e+00 : f32
    %130 = vector.broadcast %cst_62 : f32 to vector<16x16xf32>
    %131 = vector.shape_cast %129 : vector<16x1xi1> to vector<16x1xi1>
    %132 = vector.broadcast %131 : vector<16x1xi1> to vector<16x16xi1>
    %133 = arith.select %132, %120, %130 : vector<16x16xi1>, vector<16x16xf32>
    %134 = arith.truncf %133 : vector<16x16xf32> to vector<16x16xbf16>
    %c0_63 = arith.constant 0 : index
    %c0_64 = arith.constant 0 : index
    %c0_65 = arith.constant 0 : index
    %135 = vector.load %arg8[%c0_63, %c0_64, %c0_65] : memref<6x16x32xbf16, #tpu.memory_space<vmem>>, vector<1x16x32xbf16>
    %136 = vector.shape_cast %135 : vector<1x16x32xbf16> to vector<16x32xbf16>
    %cst_66 = arith.constant dense<0.000000e+00> : vector<16x32xf32>
    %137 = tpu.matmul %134, %136, %cst_66 {dimension_numbers = #tpu.dot_dimension_numbers<[1], [0], [0], [1], [0, 0, 1, 1], [], []>} : vector<16x16xbf16>, vector<16x32xbf16>, vector<16x32xf32> -> vector<16x32xf32>
    %138 = arith.addf %119, %137 : vector<16x32xf32>
    %139 = arith.truncf %118 : vector<16x16xf32> to vector<16x16xbf16>
    %c1_67 = arith.constant 1 : index
    %c0_68 = arith.constant 0 : index
    %c0_69 = arith.constant 0 : index
    %140 = vector.load %arg8[%c1_67, %c0_68, %c0_69] : memref<6x16x32xbf16, #tpu.memory_space<vmem>>, vector<1x16x32xbf16>
    %141 = vector.shape_cast %140 : vector<1x16x32xbf16> to vector<16x32xbf16>
    %cst_70 = arith.constant dense<0.000000e+00> : vector<16x32xf32>
    %142 = tpu.matmul %139, %141, %cst_70 {dimension_numbers = #tpu.dot_dimension_numbers<[1], [0], [0], [1], [0, 0, 1, 1], [], []>} : vector<16x16xbf16>, vector<16x32xbf16>, vector<16x32xf32> -> vector<16x32xf32>
    %143 = arith.addf %138, %142 : vector<16x32xf32>
    %c15_i32_71 = arith.constant 15 : i32
    %144 = tpu.dynamic_rotate %118 by %c15_i32_71 dim 0 : vector<16x16xf32>, i32 -> vector<16x16xf32>
    %c1_i32_72 = arith.constant 1 : i32
    %145 = vector.broadcast %c1_i32_72 : i32 to vector<16x1xi32>
    %146 = arith.addi %3, %145 : vector<16x1xi32>
    %c0_i32_73 = arith.constant 0 : i32
    %147 = vector.broadcast %c0_i32_73 : i32 to vector<16x1xi32>
    %148 = arith.cmpi sge, %146, %147 : vector<16x1xi32>
    %c1_i32_74 = arith.constant 1 : i32
    %149 = vector.broadcast %c1_i32_74 : i32 to vector<16x1xi32>
    %150 = arith.addi %3, %149 : vector<16x1xi32>
    %c16_i32_75 = arith.constant 16 : i32
    %151 = vector.broadcast %c16_i32_75 : i32 to vector<16x1xi32>
    %152 = arith.cmpi slt, %150, %151 : vector<16x1xi32>
    %153 = arith.andi %148, %152 : vector<16x1xi1>
    %cst_76 = arith.constant 0.000000e+00 : f32
    %154 = vector.broadcast %cst_76 : f32 to vector<16x16xf32>
    %155 = vector.shape_cast %153 : vector<16x1xi1> to vector<16x1xi1>
    %156 = vector.broadcast %155 : vector<16x1xi1> to vector<16x16xi1>
    %157 = arith.select %156, %144, %154 : vector<16x16xi1>, vector<16x16xf32>
    %158 = arith.truncf %157 : vector<16x16xf32> to vector<16x16xbf16>
    %c2_77 = arith.constant 2 : index
    %c0_78 = arith.constant 0 : index
    %c0_79 = arith.constant 0 : index
    %159 = vector.load %arg8[%c2_77, %c0_78, %c0_79] : memref<6x16x32xbf16, #tpu.memory_space<vmem>>, vector<1x16x32xbf16>
    %160 = vector.shape_cast %159 : vector<1x16x32xbf16> to vector<16x32xbf16>
    %cst_80 = arith.constant dense<0.000000e+00> : vector<16x32xf32>
    %161 = tpu.matmul %158, %160, %cst_80 {dimension_numbers = #tpu.dot_dimension_numbers<[1], [0], [0], [1], [0, 0, 1, 1], [], []>} : vector<16x16xbf16>, vector<16x32xbf16>, vector<16x32xf32> -> vector<16x32xf32>
    %162 = arith.addf %143, %161 : vector<16x32xf32>
    %c0_81 = arith.constant 0 : index
    %c0_82 = arith.constant 0 : index
    %c0_83 = arith.constant 0 : index
    %163 = vector.load %arg9[%c0_81, %c0_82, %c0_83] : memref<2x1x32xf32, #tpu.memory_space<vmem>>, vector<1x1x32xf32>
    %164 = vector.shape_cast %163 : vector<1x1x32xf32> to vector<1x32xf32>
    %165 = vector.broadcast %164 : vector<1x32xf32> to vector<16x32xf32>
    %166 = arith.addf %162, %165 : vector<16x32xf32>
    %167 = arith.addf %166, %30 : vector<16x32xf32>
    %168 = vector.broadcast %1 : vector<16x1xf32> to vector<16x32xf32>
    %169 = arith.mulf %167, %168 : vector<16x32xf32>
    %c1_84 = arith.constant 1 : index
    %c0_85 = arith.constant 0 : index
    %c0_86 = arith.constant 0 : index
    %170 = vector.load %arg2[%c1_84, %c0_85, %c0_86] : memref<2x32x32xbf16, #tpu.memory_space<vmem>>, vector<1x32x32xbf16>
    %171 = vector.shape_cast %170 : vector<1x32x32xbf16> to vector<32x32xbf16>
    %cst_87 = arith.constant dense<0.000000e+00> : vector<16x32xf32>
    %172 = tpu.matmul %2, %171, %cst_87 {dimension_numbers = #tpu.dot_dimension_numbers<[1], [0], [0], [1], [0, 0, 1, 1], [], []>} : vector<16x32xbf16>, vector<32x32xbf16>, vector<16x32xf32> -> vector<16x32xf32>
    %cst_88 = arith.constant dense<0xFF800000> : vector<16xf32>
    %173 = vector.multi_reduction <maximumf>, %172, %cst_88 [1] : vector<16x32xf32> to vector<16xf32>
    %174 = vector.shape_cast %173 : vector<16xf32> to vector<16x1xf32>
    %175 = vector.broadcast %174 : vector<16x1xf32> to vector<16x32xf32>
    %176 = arith.subf %172, %175 : vector<16x32xf32>
    %177 = math.exp %176 : vector<16x32xf32>
    %cst_89 = arith.constant dense<0.000000e+00> : vector<16xf32>
    %178 = vector.multi_reduction <add>, %177, %cst_89 [1] : vector<16x32xf32> to vector<16xf32>
    %179 = vector.shape_cast %178 : vector<16xf32> to vector<16x1xf32>
    %180 = tpu.reciprocal %179 {approx = true} : vector<16x1xf32> -> vector<16x1xf32>
    %181 = vector.broadcast %180 : vector<16x1xf32> to vector<16x32xf32>
    %182 = arith.mulf %177, %181 : vector<16x32xf32>
    %183 = arith.truncf %182 : vector<16x32xf32> to vector<16x32xbf16>
    %c1_90 = arith.constant 1 : index
    %c0_91 = arith.constant 0 : index
    %c0_92 = arith.constant 0 : index
    %184 = vector.load %arg3[%c1_90, %c0_91, %c0_92] : memref<2x32x32xbf16, #tpu.memory_space<vmem>>, vector<1x32x32xbf16>
    %185 = vector.shape_cast %184 : vector<1x32x32xbf16> to vector<32x32xbf16>
    %cst_93 = arith.constant dense<0.000000e+00> : vector<16x32xf32>
    %186 = tpu.matmul %183, %185, %cst_93 {dimension_numbers = #tpu.dot_dimension_numbers<[1], [0], [0], [1], [0, 0, 1, 1], [], []>} : vector<16x32xbf16>, vector<32x32xbf16>, vector<16x32xf32> -> vector<16x32xf32>
    %187 = arith.truncf %186 : vector<16x32xf32> to vector<16x32xbf16>
    %c1_94 = arith.constant 1 : index
    %c0_95 = arith.constant 0 : index
    %c0_96 = arith.constant 0 : index
    %188 = vector.load %arg4[%c1_94, %c0_95, %c0_96] : memref<2x32x32xbf16, #tpu.memory_space<vmem>>, vector<1x32x32xbf16>
    %189 = vector.shape_cast %188 : vector<1x32x32xbf16> to vector<32x32xbf16>
    %cst_97 = arith.constant dense<0.000000e+00> : vector<16x32xf32>
    %190 = tpu.matmul %187, %189, %cst_97 {dimension_numbers = #tpu.dot_dimension_numbers<[1], [0], [0], [1], [0, 0, 1, 1], [], []>} : vector<16x32xbf16>, vector<32x32xbf16>, vector<16x32xf32> -> vector<16x32xf32>
    %c1_98 = arith.constant 1 : index
    %c0_99 = arith.constant 0 : index
    %c0_100 = arith.constant 0 : index
    %191 = vector.load %arg5[%c1_98, %c0_99, %c0_100] : memref<2x1x32xf32, #tpu.memory_space<vmem>>, vector<1x1x32xf32>
    %192 = vector.shape_cast %191 : vector<1x1x32xf32> to vector<1x32xf32>
    %193 = vector.broadcast %192 : vector<1x32xf32> to vector<16x32xf32>
    %194 = arith.addf %190, %193 : vector<16x32xf32>
    %195 = vector.broadcast %1 : vector<16x1xf32> to vector<16x32xf32>
    %196 = arith.mulf %194, %195 : vector<16x32xf32>
    %cst_101 = arith.constant 0.000000e+00 : f32
    %197 = vector.broadcast %cst_101 : f32 to vector<16x16xf32>
    %c2_i32_102 = arith.constant 2 : i32
    %198 = tpu.dynamic_rotate %196 by %c2_i32_102 dim 0 : vector<16x32xf32>, i32 -> vector<16x32xf32>
    %c-2_i32_103 = arith.constant -2 : i32
    %199 = vector.broadcast %c-2_i32_103 : i32 to vector<16x1xi32>
    %200 = arith.addi %3, %199 : vector<16x1xi32>
    %c0_i32_104 = arith.constant 0 : i32
    %201 = vector.broadcast %c0_i32_104 : i32 to vector<16x1xi32>
    %202 = arith.cmpi sge, %200, %201 : vector<16x1xi32>
    %c-2_i32_105 = arith.constant -2 : i32
    %203 = vector.broadcast %c-2_i32_105 : i32 to vector<16x1xi32>
    %204 = arith.addi %3, %203 : vector<16x1xi32>
    %c16_i32_106 = arith.constant 16 : i32
    %205 = vector.broadcast %c16_i32_106 : i32 to vector<16x1xi32>
    %206 = arith.cmpi slt, %204, %205 : vector<16x1xi32>
    %207 = arith.andi %202, %206 : vector<16x1xi1>
    %cst_107 = arith.constant 0.000000e+00 : f32
    %208 = vector.broadcast %cst_107 : f32 to vector<16x32xf32>
    %209 = vector.shape_cast %207 : vector<16x1xi1> to vector<16x1xi1>
    %210 = vector.broadcast %209 : vector<16x1xi1> to vector<16x32xi1>
    %211 = arith.select %210, %198, %208 : vector<16x32xi1>, vector<16x32xf32>
    %212 = arith.truncf %211 : vector<16x32xf32> to vector<16x32xbf16>
    %c5 = arith.constant 5 : index
    %c0_108 = arith.constant 0 : index
    %c0_109 = arith.constant 0 : index
    %213 = vector.load %arg6[%c5, %c0_108, %c0_109] : memref<10x32x16xbf16, #tpu.memory_space<vmem>>, vector<1x32x16xbf16>
    %214 = vector.shape_cast %213 : vector<1x32x16xbf16> to vector<32x16xbf16>
    %cst_110 = arith.constant dense<0.000000e+00> : vector<16x16xf32>
    %215 = tpu.matmul %212, %214, %cst_110 {dimension_numbers = #tpu.dot_dimension_numbers<[1], [0], [0], [1], [0, 0, 1, 1], [], []>} : vector<16x32xbf16>, vector<32x16xbf16>, vector<16x16xf32> -> vector<16x16xf32>
    %216 = arith.addf %197, %215 : vector<16x16xf32>
    %c1_i32_111 = arith.constant 1 : i32
    %217 = tpu.dynamic_rotate %196 by %c1_i32_111 dim 0 : vector<16x32xf32>, i32 -> vector<16x32xf32>
    %c-1_i32_112 = arith.constant -1 : i32
    %218 = vector.broadcast %c-1_i32_112 : i32 to vector<16x1xi32>
    %219 = arith.addi %3, %218 : vector<16x1xi32>
    %c0_i32_113 = arith.constant 0 : i32
    %220 = vector.broadcast %c0_i32_113 : i32 to vector<16x1xi32>
    %221 = arith.cmpi sge, %219, %220 : vector<16x1xi32>
    %c-1_i32_114 = arith.constant -1 : i32
    %222 = vector.broadcast %c-1_i32_114 : i32 to vector<16x1xi32>
    %223 = arith.addi %3, %222 : vector<16x1xi32>
    %c16_i32_115 = arith.constant 16 : i32
    %224 = vector.broadcast %c16_i32_115 : i32 to vector<16x1xi32>
    %225 = arith.cmpi slt, %223, %224 : vector<16x1xi32>
    %226 = arith.andi %221, %225 : vector<16x1xi1>
    %cst_116 = arith.constant 0.000000e+00 : f32
    %227 = vector.broadcast %cst_116 : f32 to vector<16x32xf32>
    %228 = vector.shape_cast %226 : vector<16x1xi1> to vector<16x1xi1>
    %229 = vector.broadcast %228 : vector<16x1xi1> to vector<16x32xi1>
    %230 = arith.select %229, %217, %227 : vector<16x32xi1>, vector<16x32xf32>
    %231 = arith.truncf %230 : vector<16x32xf32> to vector<16x32xbf16>
    %c6 = arith.constant 6 : index
    %c0_117 = arith.constant 0 : index
    %c0_118 = arith.constant 0 : index
    %232 = vector.load %arg6[%c6, %c0_117, %c0_118] : memref<10x32x16xbf16, #tpu.memory_space<vmem>>, vector<1x32x16xbf16>
    %233 = vector.shape_cast %232 : vector<1x32x16xbf16> to vector<32x16xbf16>
    %cst_119 = arith.constant dense<0.000000e+00> : vector<16x16xf32>
    %234 = tpu.matmul %231, %233, %cst_119 {dimension_numbers = #tpu.dot_dimension_numbers<[1], [0], [0], [1], [0, 0, 1, 1], [], []>} : vector<16x32xbf16>, vector<32x16xbf16>, vector<16x16xf32> -> vector<16x16xf32>
    %235 = arith.addf %216, %234 : vector<16x16xf32>
    %236 = arith.truncf %196 : vector<16x32xf32> to vector<16x32xbf16>
    %c7 = arith.constant 7 : index
    %c0_120 = arith.constant 0 : index
    %c0_121 = arith.constant 0 : index
    %237 = vector.load %arg6[%c7, %c0_120, %c0_121] : memref<10x32x16xbf16, #tpu.memory_space<vmem>>, vector<1x32x16xbf16>
    %238 = vector.shape_cast %237 : vector<1x32x16xbf16> to vector<32x16xbf16>
    %cst_122 = arith.constant dense<0.000000e+00> : vector<16x16xf32>
    %239 = tpu.matmul %236, %238, %cst_122 {dimension_numbers = #tpu.dot_dimension_numbers<[1], [0], [0], [1], [0, 0, 1, 1], [], []>} : vector<16x32xbf16>, vector<32x16xbf16>, vector<16x16xf32> -> vector<16x16xf32>
    %240 = arith.addf %235, %239 : vector<16x16xf32>
    %c15_i32_123 = arith.constant 15 : i32
    %241 = tpu.dynamic_rotate %196 by %c15_i32_123 dim 0 : vector<16x32xf32>, i32 -> vector<16x32xf32>
    %c1_i32_124 = arith.constant 1 : i32
    %242 = vector.broadcast %c1_i32_124 : i32 to vector<16x1xi32>
    %243 = arith.addi %3, %242 : vector<16x1xi32>
    %c0_i32_125 = arith.constant 0 : i32
    %244 = vector.broadcast %c0_i32_125 : i32 to vector<16x1xi32>
    %245 = arith.cmpi sge, %243, %244 : vector<16x1xi32>
    %c1_i32_126 = arith.constant 1 : i32
    %246 = vector.broadcast %c1_i32_126 : i32 to vector<16x1xi32>
    %247 = arith.addi %3, %246 : vector<16x1xi32>
    %c16_i32_127 = arith.constant 16 : i32
    %248 = vector.broadcast %c16_i32_127 : i32 to vector<16x1xi32>
    %249 = arith.cmpi slt, %247, %248 : vector<16x1xi32>
    %250 = arith.andi %245, %249 : vector<16x1xi1>
    %cst_128 = arith.constant 0.000000e+00 : f32
    %251 = vector.broadcast %cst_128 : f32 to vector<16x32xf32>
    %252 = vector.shape_cast %250 : vector<16x1xi1> to vector<16x1xi1>
    %253 = vector.broadcast %252 : vector<16x1xi1> to vector<16x32xi1>
    %254 = arith.select %253, %241, %251 : vector<16x32xi1>, vector<16x32xf32>
    %255 = arith.truncf %254 : vector<16x32xf32> to vector<16x32xbf16>
    %c8 = arith.constant 8 : index
    %c0_129 = arith.constant 0 : index
    %c0_130 = arith.constant 0 : index
    %256 = vector.load %arg6[%c8, %c0_129, %c0_130] : memref<10x32x16xbf16, #tpu.memory_space<vmem>>, vector<1x32x16xbf16>
    %257 = vector.shape_cast %256 : vector<1x32x16xbf16> to vector<32x16xbf16>
    %cst_131 = arith.constant dense<0.000000e+00> : vector<16x16xf32>
    %258 = tpu.matmul %255, %257, %cst_131 {dimension_numbers = #tpu.dot_dimension_numbers<[1], [0], [0], [1], [0, 0, 1, 1], [], []>} : vector<16x32xbf16>, vector<32x16xbf16>, vector<16x16xf32> -> vector<16x16xf32>
    %259 = arith.addf %240, %258 : vector<16x16xf32>
    %c14_i32_132 = arith.constant 14 : i32
    %260 = tpu.dynamic_rotate %196 by %c14_i32_132 dim 0 : vector<16x32xf32>, i32 -> vector<16x32xf32>
    %c2_i32_133 = arith.constant 2 : i32
    %261 = vector.broadcast %c2_i32_133 : i32 to vector<16x1xi32>
    %262 = arith.addi %3, %261 : vector<16x1xi32>
    %c0_i32_134 = arith.constant 0 : i32
    %263 = vector.broadcast %c0_i32_134 : i32 to vector<16x1xi32>
    %264 = arith.cmpi sge, %262, %263 : vector<16x1xi32>
    %c2_i32_135 = arith.constant 2 : i32
    %265 = vector.broadcast %c2_i32_135 : i32 to vector<16x1xi32>
    %266 = arith.addi %3, %265 : vector<16x1xi32>
    %c16_i32_136 = arith.constant 16 : i32
    %267 = vector.broadcast %c16_i32_136 : i32 to vector<16x1xi32>
    %268 = arith.cmpi slt, %266, %267 : vector<16x1xi32>
    %269 = arith.andi %264, %268 : vector<16x1xi1>
    %cst_137 = arith.constant 0.000000e+00 : f32
    %270 = vector.broadcast %cst_137 : f32 to vector<16x32xf32>
    %271 = vector.shape_cast %269 : vector<16x1xi1> to vector<16x1xi1>
    %272 = vector.broadcast %271 : vector<16x1xi1> to vector<16x32xi1>
    %273 = arith.select %272, %260, %270 : vector<16x32xi1>, vector<16x32xf32>
    %274 = arith.truncf %273 : vector<16x32xf32> to vector<16x32xbf16>
    %c9 = arith.constant 9 : index
    %c0_138 = arith.constant 0 : index
    %c0_139 = arith.constant 0 : index
    %275 = vector.load %arg6[%c9, %c0_138, %c0_139] : memref<10x32x16xbf16, #tpu.memory_space<vmem>>, vector<1x32x16xbf16>
    %276 = vector.shape_cast %275 : vector<1x32x16xbf16> to vector<32x16xbf16>
    %cst_140 = arith.constant dense<0.000000e+00> : vector<16x16xf32>
    %277 = tpu.matmul %274, %276, %cst_140 {dimension_numbers = #tpu.dot_dimension_numbers<[1], [0], [0], [1], [0, 0, 1, 1], [], []>} : vector<16x32xbf16>, vector<32x16xbf16>, vector<16x16xf32> -> vector<16x16xf32>
    %278 = arith.addf %259, %277 : vector<16x16xf32>
    %c1_141 = arith.constant 1 : index
    %c0_142 = arith.constant 0 : index
    %c0_143 = arith.constant 0 : index
    %279 = vector.load %arg7[%c1_141, %c0_142, %c0_143] : memref<2x1x16xf32, #tpu.memory_space<vmem>>, vector<1x1x16xf32>
    %280 = vector.shape_cast %279 : vector<1x1x16xf32> to vector<1x16xf32>
    %281 = vector.broadcast %280 : vector<1x16xf32> to vector<16x16xf32>
    %282 = arith.addf %278, %281 : vector<16x16xf32>
    %cst_144 = arith.constant 0.000000e+00 : f32
    %283 = vector.broadcast %cst_144 : f32 to vector<16x16xf32>
    %284 = arith.maximumf %282, %283 : vector<16x16xf32>
    %cst_145 = arith.constant 0.000000e+00 : f32
    %285 = vector.broadcast %cst_145 : f32 to vector<16x32xf32>
    %c1_i32_146 = arith.constant 1 : i32
    %286 = tpu.dynamic_rotate %284 by %c1_i32_146 dim 0 : vector<16x16xf32>, i32 -> vector<16x16xf32>
    %c-1_i32_147 = arith.constant -1 : i32
    %287 = vector.broadcast %c-1_i32_147 : i32 to vector<16x1xi32>
    %288 = arith.addi %3, %287 : vector<16x1xi32>
    %c0_i32_148 = arith.constant 0 : i32
    %289 = vector.broadcast %c0_i32_148 : i32 to vector<16x1xi32>
    %290 = arith.cmpi sge, %288, %289 : vector<16x1xi32>
    %c-1_i32_149 = arith.constant -1 : i32
    %291 = vector.broadcast %c-1_i32_149 : i32 to vector<16x1xi32>
    %292 = arith.addi %3, %291 : vector<16x1xi32>
    %c16_i32_150 = arith.constant 16 : i32
    %293 = vector.broadcast %c16_i32_150 : i32 to vector<16x1xi32>
    %294 = arith.cmpi slt, %292, %293 : vector<16x1xi32>
    %295 = arith.andi %290, %294 : vector<16x1xi1>
    %cst_151 = arith.constant 0.000000e+00 : f32
    %296 = vector.broadcast %cst_151 : f32 to vector<16x16xf32>
    %297 = vector.shape_cast %295 : vector<16x1xi1> to vector<16x1xi1>
    %298 = vector.broadcast %297 : vector<16x1xi1> to vector<16x16xi1>
    %299 = arith.select %298, %286, %296 : vector<16x16xi1>, vector<16x16xf32>
    %300 = arith.truncf %299 : vector<16x16xf32> to vector<16x16xbf16>
    %c3_152 = arith.constant 3 : index
    %c0_153 = arith.constant 0 : index
    %c0_154 = arith.constant 0 : index
    %301 = vector.load %arg8[%c3_152, %c0_153, %c0_154] : memref<6x16x32xbf16, #tpu.memory_space<vmem>>, vector<1x16x32xbf16>
    %302 = vector.shape_cast %301 : vector<1x16x32xbf16> to vector<16x32xbf16>
    %cst_155 = arith.constant dense<0.000000e+00> : vector<16x32xf32>
    %303 = tpu.matmul %300, %302, %cst_155 {dimension_numbers = #tpu.dot_dimension_numbers<[1], [0], [0], [1], [0, 0, 1, 1], [], []>} : vector<16x16xbf16>, vector<16x32xbf16>, vector<16x32xf32> -> vector<16x32xf32>
    %304 = arith.addf %285, %303 : vector<16x32xf32>
    %305 = arith.truncf %284 : vector<16x16xf32> to vector<16x16xbf16>
    %c4_156 = arith.constant 4 : index
    %c0_157 = arith.constant 0 : index
    %c0_158 = arith.constant 0 : index
    %306 = vector.load %arg8[%c4_156, %c0_157, %c0_158] : memref<6x16x32xbf16, #tpu.memory_space<vmem>>, vector<1x16x32xbf16>
    %307 = vector.shape_cast %306 : vector<1x16x32xbf16> to vector<16x32xbf16>
    %cst_159 = arith.constant dense<0.000000e+00> : vector<16x32xf32>
    %308 = tpu.matmul %305, %307, %cst_159 {dimension_numbers = #tpu.dot_dimension_numbers<[1], [0], [0], [1], [0, 0, 1, 1], [], []>} : vector<16x16xbf16>, vector<16x32xbf16>, vector<16x32xf32> -> vector<16x32xf32>
    %309 = arith.addf %304, %308 : vector<16x32xf32>
    %c15_i32_160 = arith.constant 15 : i32
    %310 = tpu.dynamic_rotate %284 by %c15_i32_160 dim 0 : vector<16x16xf32>, i32 -> vector<16x16xf32>
    %c1_i32_161 = arith.constant 1 : i32
    %311 = vector.broadcast %c1_i32_161 : i32 to vector<16x1xi32>
    %312 = arith.addi %3, %311 : vector<16x1xi32>
    %c0_i32_162 = arith.constant 0 : i32
    %313 = vector.broadcast %c0_i32_162 : i32 to vector<16x1xi32>
    %314 = arith.cmpi sge, %312, %313 : vector<16x1xi32>
    %c1_i32_163 = arith.constant 1 : i32
    %315 = vector.broadcast %c1_i32_163 : i32 to vector<16x1xi32>
    %316 = arith.addi %3, %315 : vector<16x1xi32>
    %c16_i32_164 = arith.constant 16 : i32
    %317 = vector.broadcast %c16_i32_164 : i32 to vector<16x1xi32>
    %318 = arith.cmpi slt, %316, %317 : vector<16x1xi32>
    %319 = arith.andi %314, %318 : vector<16x1xi1>
    %cst_165 = arith.constant 0.000000e+00 : f32
    %320 = vector.broadcast %cst_165 : f32 to vector<16x16xf32>
    %321 = vector.shape_cast %319 : vector<16x1xi1> to vector<16x1xi1>
    %322 = vector.broadcast %321 : vector<16x1xi1> to vector<16x16xi1>
    %323 = arith.select %322, %310, %320 : vector<16x16xi1>, vector<16x16xf32>
    %324 = arith.truncf %323 : vector<16x16xf32> to vector<16x16xbf16>
    %c5_166 = arith.constant 5 : index
    %c0_167 = arith.constant 0 : index
    %c0_168 = arith.constant 0 : index
    %325 = vector.load %arg8[%c5_166, %c0_167, %c0_168] : memref<6x16x32xbf16, #tpu.memory_space<vmem>>, vector<1x16x32xbf16>
    %326 = vector.shape_cast %325 : vector<1x16x32xbf16> to vector<16x32xbf16>
    %cst_169 = arith.constant dense<0.000000e+00> : vector<16x32xf32>
    %327 = tpu.matmul %324, %326, %cst_169 {dimension_numbers = #tpu.dot_dimension_numbers<[1], [0], [0], [1], [0, 0, 1, 1], [], []>} : vector<16x16xbf16>, vector<16x32xbf16>, vector<16x32xf32> -> vector<16x32xf32>
    %328 = arith.addf %309, %327 : vector<16x32xf32>
    %c1_170 = arith.constant 1 : index
    %c0_171 = arith.constant 0 : index
    %c0_172 = arith.constant 0 : index
    %329 = vector.load %arg9[%c1_170, %c0_171, %c0_172] : memref<2x1x32xf32, #tpu.memory_space<vmem>>, vector<1x1x32xf32>
    %330 = vector.shape_cast %329 : vector<1x1x32xf32> to vector<1x32xf32>
    %331 = vector.broadcast %330 : vector<1x32xf32> to vector<16x32xf32>
    %332 = arith.addf %328, %331 : vector<16x32xf32>
    %333 = arith.addf %332, %196 : vector<16x32xf32>
    %334 = vector.broadcast %1 : vector<16x1xf32> to vector<16x32xf32>
    %335 = arith.mulf %333, %334 : vector<16x32xf32>
    %336 = tpu.concatenate %169, %16, %335, %182 in 1 : vector<16x32xf32>, vector<16x32xf32>, vector<16x32xf32>, vector<16x32xf32> -> vector<16x128xf32>
    %c0_173 = arith.constant 0 : index
    %c0_174 = arith.constant 0 : index
    %337 = vector.load %arg10[%c0_173, %c0_174] : memref<16x128xf32, #tpu.memory_space<vmem>>, vector<16x128xf32>
    tpu.vector_store %arg10[%c0_173, %c0_174], %336 {strides = array<i32>} : memref<16x128xf32, #tpu.memory_space<vmem>>, vector<16x128xf32>,
    return
  }
}

</mosaic_0001>

<bundles_post_ra>
// kernel: run_encoder.1
= control target key start
LH: loop header
LB: loop body
LE: loop exit
PB: predicated region body
PF: predicated region fallthrough
CT: control target
= control target key end

     0   :  { %vm60_vm0 = vcmask 261120   ;;  %v1342_v31 = vmov 0   ;;  %v41_v46 = vlaneseq  ;;  %vm467_vm9 = vcmask 130048   ;;  %s1343_s21 = smov 32   ;;  %s1344_s26 = smov 96   ;;  %s1750_s2 = inlined_call_operand.vmem [shape: bf16[2,32,32], index: 2, kind: input, shape index: {}]   ;;  %s1751_s0 = inlined_call_operand.vmem [shape: f32[16,32], index: 0, kind: input, shape index: {}]   ;;  %s1752_s3 = inlined_call_operand.vmem [shape: bf16[2,32,32], index: 3, kind: input, shape index: {}]   ;;  %s1753_s5 = inlined_call_operand.vmem [shape: f32[2,1,32], index: 5, kind: input, shape index: {}]   ;;  %s1754_s4 = inlined_call_operand.vmem [shape: bf16[2,32,32], index: 4, kind: input, shape index: {}]   ;;  %s1755_s1 = inlined_call_operand.vmem [shape: f32[16,1], index: 1, kind: input, shape index: {}]   ;;  %s1756_s6 = inlined_call_operand.vmem [shape: bf16[10,32,16], index: 6, kind: input, shape index: {}]   ;;  %s1757_s7 = inlined_call_operand.vmem [shape: f32[2,1,16], index: 7, kind: input, shape index: {}]   ;;  %s1758_s8 = inlined_call_operand.vmem [shape: bf16[6,16,32], index: 8, kind: input, shape index: {}]   ;;  %s1759_s9 = inlined_call_operand.vmem [shape: f32[2,1,32], index: 9, kind: input, shape index: {}]   ;;  %s1760_s10 = inlined_call_operand.vmem [shape: f32[16,128], index: 10, kind: output, shape index: {}]  }
   0x1   :  { %v1277_v0 = vld [vmem:[%s1750_s2 + $0x8] sm:$0xff]  ;;  %v1276_v1 = vld [vmem:[%s1750_s2] sm:$0xff]  ;;  %1318 = vset.pattern.permute.xlu2 %v1342_v31  ;;  %1319 = vset.pattern.permute.xlu0 %v1342_v31  ;;  %v1285_v37 = vld [vmem:[%s1756_s6 + $0x18] sm:$0xff]  ;;  %s1345_s14 = smov 64   ;;  %vm1029_vm10 = vcmask 523264   ;;  %vm1032_vm11 = vcmask 785408  }
   0x2   :  { %70 = vmatpush.bf16.msra.mxu0 %v1277_v0  ;;  %v36_v2 = vld [vmem:[%s1751_s0] sm:$0xff]  ;;  %v37_v3 = vld [vmem:[%s1751_s0 + $0x8] sm:$0xff]  ;;  %v1289_v40 = vld [vmem:[%s1756_s6 + $0x38] sm:$0xff]  ;;  %254 = vmatpush.bf16.msra.mxu3 %v1285_v37  ;;  %v1482_v50 = vshrl.u32 %v41_v46, 7 }
   0x3   :  { %v1413_v4 = vpack.c.bf16 %v37_v3, %v36_v2  ;;  %v1279_v19 = vld [vmem:[%s1752_s3 + $0x8] sm:$0xff]  ;;  %v1278_v20 = vld [vmem:[%s1752_s3] sm:$0xff]  ;;  %v1284_v41 = vld [vmem:[%s1756_s6 + $0x10] sm:$0xff] }
   0x4   :  { %126 = vmatpush.bf16.msra.mxu1 %v1279_v19  ;;  %v1281_v28 = vld [vmem:[%s1754_s4 + $0x8] sm:$0xff]  ;;  %v1280_v29 = vld [vmem:[%s1754_s4] sm:$0xff]  ;;  %v1288_v43 = vld [vmem:[%s1756_s6 + $0x30] sm:$0xff]  ;;  %v43_v52 = vadd.s32 8, %v1482_v50  ;;  %v1489_v55 = vadd.s32 4294967295, %v1482_v50  ;;  %v1492_v56 = vadd.s32 4294967294, %v1482_v50 }
   0x5   :  { %164 = vmatpush.bf16.msra.mxu2 %v1281_v28  ;;  %v38_v30 = vld [vmem:[%s1755_s1] sm:$0xff]  ;;  %v39_v32 = vld [vmem:[%s1755_s1 + $0x8] sm:$0xff]  ;;  %vm210_vm1 = vcmp.lt.s32.totalorder %v1482_v50, 1  ;;  %vm186_vm2 = vcmp.lt.s32.totalorder %v1482_v50, 2  ;;  %vm330_vm3 = vcmp.lt.s32.totalorder %v1482_v50, 7  ;;  %vm386_vm7 = vcmp.lt.s32.totalorder %v1482_v50, 6 }
   0x6   :  { %71 = vmatpush.bf16.msra.mxu0 %v1276_v1  ;;  %174 = vperm.xlu2 %1318, %v38_v30   ;;  %v1287_v36 = vld [vmem:[%s1756_s6 + $0x28] sm:$0xff]  ;;  %v1286_v39 = vld [vmem:[%s1756_s6 + $0x20] sm:$0xff]  ;;  %v1496_v59 = vadd.s32 1, %v43_v52  ;;  %vm215_vm4 = vcmp.ge.s32.totalorder %v1489_v55, 0  ;;  %vm191_vm5 = vcmp.ge.s32.totalorder %v1492_v56, 0  ;;  %v1294_v31 = vld [vmem:[%s1758_s8 + $0x10] sm:$0xff] }
   0x7   :  { %v1283_v38 = vld [vmem:[%s1756_s6 + $0x8] sm:$0xff]  ;;  %v1282_v42 = vld [vmem:[%s1756_s6] sm:$0xff]  ;;  %255 = vmatpush.bf16.msra.mxu3 %v1284_v41 }
   0x8   :  { %127 = vmatpush.bf16.msra.mxu1 %v1278_v20  ;;  %v1291_v44 = vld [vmem:[%s1756_s6 + $0x48] sm:$0xff]  ;;  %v1290_v45 = vld [vmem:[%s1756_s6 + $0x40] sm:$0xff]  ;;  %vm338_vm6 = vcmp.lt.s32.totalorder %v1496_v59, 16  ;;  %v1544_v20 = vadd.s32 2, %v43_v52 }
   0x9   :  { %1049 = vmatmul.msk.bf16.vlgmr.msra.gmra.mxu0 %vm60_vm0, %v1413_v4  ;;  %165 = vmatpush.bf16.msra.mxu2 %v1280_v29  ;;  %v1320_v48 = vld [vmem:[%s1753_s5] ss:$0 sm:$0xff]  ;;  %v1293_v28 = vld [vmem:[%s1758_s8 + $0x8] sm:$0xff]  ;;  %v1325_v50 = vld [vmem:[%s1759_s9 + $0x1] ss:$0 sm:$0xff] }
   0xa   :  { %283 = vmatpush.bf16.msrb.mxu0 %v1283_v38  ;;  %vm394_vm8 = vcmp.lt.s32.totalorder %v1544_v20, 16  ;;  %v1292_v30 = vld [vmem:[%s1758_s8] sm:$0xff]  ;;  %v1313_v20 = vld [vmem:[%s1758_s8 + $0x28] sm:$0xff] }
   0xb   :  { %430 = vmatpush.bf16.msrb.mxu3 %v1291_v44 }
   0xc   :  { %318 = vmatpush.bf16.msrb.mxu1 %v1287_v36 }
   0xd   :  { %374 = vmatpush.bf16.msrb.mxu2 %v1289_v40 }
   0xe   :  { %179 = vperm.xlu2 %1318, %v39_v32   ;;  %284 = vmatpush.bf16.msrb.mxu0 %v1282_v42 }
   0xf   :  { %431 = vmatpush.bf16.msrb.mxu3 %v1290_v45 }
  0x10   :  { %319 = vmatpush.bf16.msrb.mxu1 %v1286_v39 }
  0x11   :  { %375 = vmatpush.bf16.msrb.mxu2 %v1288_v43  ;;  %v1321_v43 = vld [vmem:[%s1757_s7] ss:$0 sm:$0xff] }
  0x12   :  { %478 = vmatpush.bf16.msra.mxu0 %v1293_v28 }
  0x60   :  { %v1477_v47 = vpop.permute.xlu2 %174 }
  0x68   :  { %v1494_v58 = vpop.permute.xlu2 %179 }
  0x86   :  { %v73_v5 = vpop.f32.mrf.mxu0 }
  0x87   :  { %v78_v6 = vsel %vm60_vm0, %v73_v5, -inf }
  0x88   :  { %79 = vmax.xlane.f32.xlu0 %v78_v6 }
  0x8e   :  { %v75_v7 = vpop.f32.mrf.mxu0 }
  0x8f   :  { %v81_v8 = vsel %vm60_vm0, %v75_v7, -inf }
  0x90   :  { %82 = vmax.xlane.f32.xlu0 %v81_v8 }
  0xfb   :  { %v80_v9 = vpop.xlane.xlu0 %79 }
  0xfc   :  { %v84_v10 = vsub.f32 %v73_v5, %v80_v9 }
  0xfe   :  { %v86_v11 = vmul.f32 1.442695, %v84_v10 }
 0x100   :  { %1326 = vpow2.f32 %v86_v11 }
 0x103   :  { %v83_v12 = vpop.xlane.xlu0 %82 }
 0x104   :  { %v85_v13 = vsub.f32 %v75_v7, %v83_v12 }
 0x106   :  { %v1327_v14 = vpop.eup %1326  ;;  %v88_v15 = vmul.f32 1.442695, %v85_v13  ;;  %v1296_v13 = vld [vmem:[%s1750_s2 + $0x18] sm:$0xff] }
 0x107   :  { %v90_v16 = vsel %vm60_vm0, %v1327_v14, 0.0 }
 0x108   :  { %1328 = vpow2.f32 %v88_v15  ;;  %91 = vadd.xlane.f32.xlu1 %v90_v16 }
 0x10e   :  { %v1329_v17 = vpop.eup %1328 }
 0x10f   :  { %v93_v18 = vsel %vm60_vm0, %v1329_v17, 0.0 }
 0x110   :  { %94 = vadd.xlane.f32.xlu1 %v93_v18  ;;  %v1295_v18 = vld [vmem:[%s1750_s2 + $0x10] sm:$0xff] }
 0x17b   :  { %v92_v21 = vpop.xlane.xlu1 %91 }
 0x17c   :  { %1330 = vrcp.f32 %v92_v21 }
 0x182   :  { %v1331_v23 = vpop.eup %1330 }
 0x183   :  { %v95_v22 = vpop.xlane.xlu1 %94  ;;  %v1427_v25 = vmul.f32 %v1331_v23, %v1327_v14 }
 0x184   :  { %1332 = vrcp.f32 %v95_v22 }
 0x18a   :  { %v1333_v24 = vpop.eup %1332 }
 0x18b   :  { %v1429_v26 = vmul.f32 %v1333_v24, %v1329_v17 }
 0x18d   :  { %v100_v27 = vpack.c.bf16 %v1429_v26, %v1427_v25 }
 0x18f   :  { %1058 = vmatmul.msk.bf16.vlgmr.msra.gmra.mxu1 %vm60_vm0, %v100_v27 }
 0x190   :  { %501 = vmatpush.bf16.msra.mxu1 %v1292_v30 }
 0x20c   :  { %v129_v33 = vpop.f32.mrf.mxu1 }
 0x214   :  { %v131_v34 = vpop.f32.mrf.mxu1 }
 0x215   :  { %v134_v35 = vpack.c.bf16 %v131_v34, %v129_v33 }
 0x217   :  { %1067 = vmatmul.msk.bf16.vlgmr.msra.gmra.mxu2 %vm60_vm0, %v134_v35 }
 0x218   :  { %534 = vmatpush.bf16.msra.mxu2 %v1294_v31 }
 0x29a   :  { %v167_v49 = vpop.f32.mrf.mxu2 }
 0x29b   :  { %v168_v51 = vadd.f32 %v1320_v48, %v167_v49 }
 0x29d   :  { %v1486_v53 = vmul.f32 %v1477_v47, %v168_v51 }
 0x29f   :  { %v208_v61 = vrot.slane %v1486_v53, 7  ;;  %v184_v62 = vrot.slane %v1486_v53, 6  ;;  %v328_v3 = vrot.slane %v1486_v53, 1  ;;  %v384_v21 = vrot.slane %v1486_v53, 2 }
 0x2a2   :  { %v169_v54 = vpop.f32.mrf.mxu2 }
 0x2a3   :  { %v170_v57 = vadd.f32 %v1320_v48, %v169_v54 }
 0x2a5   :  { %v1499_v60 = vmul.f32 %v1494_v58, %v170_v57 }
 0x2a7   :  { %v291_v63 = vpack.c.bf16 %v1499_v60, %v1486_v53  ;;  %v209_v0 = vrot.slane %v1499_v60, 7  ;;  %v185_v1 = vrot.slane %v1499_v60, 6  ;;  %v329_v2 = vrot.slane %v1499_v60, 1 }
 0x2a8   :  { %v385_v19 = vrot.slane %v1499_v60, 2 }
 0x2a9   :  { %1102 = vmatmul.msk.bf16.vlgmr.msrb.gmra.mxu1 %vm60_vm0, %v291_v63  ;;  %v211_v5 = vsel %vm210_vm1, %v208_v61, %v209_v0  ;;  %v212_v6 = vsel %vm210_vm1, %v209_v0, %v208_v61  ;;  %v187_v7 = vsel %vm186_vm2, %v184_v62, %v185_v1  ;;  %v188_v8 = vsel %vm186_vm2, %v185_v1, %v184_v62 }
 0x2aa   :  { %v225_v9 = vsel %vm215_vm4, %v212_v6, 0.0  ;;  %v201_v10 = vsel %vm191_vm5, %v188_v8, 0.0  ;;  %v331_v11 = vsel %vm330_vm3, %v328_v3, %v329_v2  ;;  %v332_v12 = vsel %vm330_vm3, %v329_v2, %v328_v3 }
 0x2ab   :  { %v227_v14 = vpack.c.bf16 %v211_v5, %v225_v9  ;;  %v203_v15 = vpack.c.bf16 %v187_v7, %v201_v10  ;;  %v346_v16 = vsel %vm338_vm6, %v332_v12, 0.0  ;;  %v388_v22 = vsel %vm386_vm7, %v385_v19, %v384_v21 }
 0x2ac   :  { %v347_v17 = vpack.c.bf16 %v346_v16, %v331_v11  ;;  %v387_v23 = vsel %vm386_vm7, %v384_v21, %v385_v19  ;;  %v402_v24 = vsel %vm394_vm8, %v388_v22, 0.0 }
 0x2ad   :  { %1080 = vmatmul.msk.bf16.vlgmr.msra.gmra.mxu3 %vm60_vm0, %v227_v14  ;;  %1089 = vmatmul.msk.bf16.vlgmr.msrb.gmra.mxu0 %vm60_vm0, %v203_v15  ;;  %v403_v27 = vpack.c.bf16 %v402_v24, %v387_v23 }
 0x2ae   :  { %1115 = vmatmul.msk.bf16.vlgmr.msrb.gmra.mxu2 %vm60_vm0, %v347_v17  ;;  %576 = vmatpush.bf16.msra.mxu3 %v1296_v13 }
 0x2b2   :  { %577 = vmatpush.bf16.msra.mxu3 %v1295_v18 }
 0x2bd   :  { %1128 = vmatmul.msk.bf16.vlgmr.msrb.gmra.mxu3 %vm60_vm0, %v403_v27 }
 0x2cd   :  { %1160 = vmatmul.msk.bf16.vlgmr.msra.gmra.mxu3 %vm60_vm0, %v1413_v4 }
 0x326   :  { %v321_v33 = vpop.f32.mrf.mxu1 }
 0x32a   :  { %v286_v32 = vpop.f32.mrf.mxu0 }
 0x32e   :  { %v323_v41 = vpop.f32.mrf.mxu1 }
 0x330   :  { %v257_v29 = vpop.f32.mrf.mxu3 }
 0x331   :  { %v287_v34 = vadd.f32 %v286_v32, %v257_v29  ;;  %v377_v36 = vpop.f32.mrf.mxu2  ;;  %v1298_v32 = vld [vmem:[%s1752_s3 + $0x18] sm:$0xff] }
 0x332   :  { %v288_v37 = vpop.f32.mrf.mxu0  ;;  %633 = vmatpush.bf16.msrb.mxu0 %v1298_v32 }
 0x333   :  { %v326_v35 = vadd.f32 %v321_v33, %v287_v34  ;;  %v1297_v33 = vld [vmem:[%s1752_s3 + $0x10] sm:$0xff] }
 0x335   :  { %v382_v39 = vadd.f32 %v377_v36, %v326_v35 }
 0x336   :  { %634 = vmatpush.bf16.msrb.mxu0 %v1297_v33 }
 0x338   :  { %v259_v4 = vpop.f32.mrf.mxu3 }
 0x339   :  { %v289_v38 = vadd.f32 %v288_v37, %v259_v4  ;;  %v379_v45 = vpop.f32.mrf.mxu2 }
 0x33b   :  { %v327_v44 = vadd.f32 %v323_v41, %v289_v38 }
 0x33d   :  { %v383_v48 = vadd.f32 %v379_v45, %v327_v44  ;;  %v1304_v45 = vld [vmem:[%s1756_s6 + $0x68] sm:$0xff] }
 0x33e   :  { %728 = vmatpush.bf16.msrb.mxu2 %v1304_v45 }
 0x340   :  { %v433_v40 = vpop.f32.mrf.mxu3 }
 0x341   :  { %v438_v42 = vadd.f32 %v433_v40, %v382_v39  ;;  %v1300_v39 = vld [vmem:[%s1754_s4 + $0x18] sm:$0xff]  ;;  %v1299_v40 = vld [vmem:[%s1754_s4 + $0x10] sm:$0xff] }
 0x342   :  { %673 = vmatpush.bf16.msrb.mxu1 %v1300_v39 }
 0x343   :  { %v444_v46 = vadd.f32 %v1321_v43, %v438_v42 }
 0x345   :  { %v446_v52 = vmax.f32 %v444_v46, 0.0  ;;  %v1306_v46 = vld [vmem:[%s1756_s6 + $0x78] sm:$0xff] }
 0x346   :  { %674 = vmatpush.bf16.msrb.mxu1 %v1299_v40 }
 0x347   :  { %v448_v61 = vrot.slane %v446_v52, 7  ;;  %v508_v62 = vrot.slane %v446_v52, 1 }
 0x348   :  { %v435_v49 = vpop.f32.mrf.mxu3 }
 0x349   :  { %v439_v51 = vadd.f32 %v435_v49, %v383_v48  ;;  %v1303_v48 = vld [vmem:[%s1756_s6 + $0x60] sm:$0xff]  ;;  %v1302_v49 = vld [vmem:[%s1756_s6 + $0x58] sm:$0xff] }
 0x34a   :  { %729 = vmatpush.bf16.msrb.mxu2 %v1303_v48  ;;  %757 = vmatpush.bf16.msrb.mxu3 %v1302_v49 }
 0x34b   :  { %v445_v54 = vadd.f32 %v1321_v43, %v439_v51  ;;  %v1305_v51 = vld [vmem:[%s1756_s6 + $0x70] sm:$0xff] }
 0x34d   :  { %v447_v57 = vmax.f32 %v445_v54, 0.0  ;;  %v1301_v54 = vld [vmem:[%s1756_s6 + $0x50] sm:$0xff] }
 0x34e   :  { %758 = vmatpush.bf16.msrb.mxu3 %v1301_v54  ;;  %v1324_v54 = vld [vmem:[%s1757_s7 + $0x1] ss:$0 sm:$0xff] }
 0x34f   :  { %v449_v63 = vrot.slane %v447_v57, 7  ;;  %v457_v0 = vpack.c.bf16 %v447_v57, %v446_v52  ;;  %v509_v1 = vrot.slane %v447_v57, 1  ;;  %v1308_v52 = vld [vmem:[%s1756_s6 + $0x88] sm:$0xff]  ;;  %v1307_v57 = vld [vmem:[%s1756_s6 + $0x80] sm:$0xff] }
 0x350   :  { %v579_v2 = vpop.f32.mrf.mxu3 }
 0x351   :  { %v450_v3 = vsel %vm210_vm1, %v448_v61, %v449_v63  ;;  %v451_v5 = vsel %vm210_vm1, %v449_v63, %v448_v61  ;;  %v510_v6 = vsel %vm330_vm3, %v508_v62, %v509_v1  ;;  %v511_v7 = vsel %vm330_vm3, %v509_v1, %v508_v62  ;;  %1135 = vmatmul.msk.bf16.vlgmr.msra.gmra.mxu0 %vm467_vm9, %v457_v0  ;;  %v1310_v61 = vld [vmem:[%s1756_s6 + $0x98] sm:$0xff]  ;;  %v1309_v62 = vld [vmem:[%s1756_s6 + $0x90] sm:$0xff]  ;;  %v1323_v0 = vld [vmem:[%s1753_s5 + $0x1] ss:$0 sm:$0xff] }
 0x352   :  { %v584_v8 = vsel %vm60_vm0, %v579_v2, -inf  ;;  %v452_v9 = vsel %vm215_vm4, %v451_v5, 0.0  ;;  %v513_v10 = vsel %vm338_vm6, %v511_v7, 0.0  ;;  %792 = vmatpush.bf16.msra.mxu0 %v1306_v46 }
 0x353   :  { %585 = vmax.xlane.f32.xlu0 %v584_v8  ;;  %v454_v11 = vpack.c.bf16 %v450_v3, %v452_v9  ;;  %v514_v12 = vpack.c.bf16 %v513_v10, %v510_v6 }
 0x355   :  { %1140 = vmatmul.msk.bf16.vlgmr.msra.gmra.mxu1 %vm467_vm9, %v454_v11  ;;  %1147 = vmatmul.msk.bf16.vlgmr.msra.gmra.mxu2 %vm467_vm9, %v514_v12 }
 0x356   :  { %835 = vmatpush.bf16.msra.mxu1 %v1308_v52  ;;  %793 = vmatpush.bf16.msra.mxu0 %v1305_v51 }
 0x357   :  { %878 = vmatpush.bf16.msra.mxu2 %v1310_v61 }
 0x358   :  { %v581_v13 = vpop.f32.mrf.mxu3 }
 0x359   :  { %v587_v14 = vsel %vm60_vm0, %v581_v13, -inf }
 0x35a   :  { %588 = vmax.xlane.f32.xlu1 %v587_v14  ;;  %836 = vmatpush.bf16.msra.mxu1 %v1307_v57 }
 0x35b   :  { %879 = vmatpush.bf16.msra.mxu2 %v1309_v62 }
 0x373   :  { %1005 = vrot.lane.b32.xlu1 %v1427_v25, %s1343_s21 }
 0x3c6   :  { %v586_v15 = vpop.xlane.xlu0 %585 }
 0x3c7   :  { %v590_v16 = vsub.f32 %v579_v2, %v586_v15 }
 0x3c9   :  { %v592_v17 = vmul.f32 1.442695, %v590_v16 }
 0x3cb   :  { %1334 = vpow2.f32 %v592_v17 }
 0x3cd   :  { %v589_v18 = vpop.xlane.xlu1 %588 }
 0x3ce   :  { %v591_v19 = vsub.f32 %v581_v13, %v589_v18  ;;  %v480_v23 = vpop.f32.mrf.mxu0 }
 0x3d0   :  { %v594_v21 = vmul.f32 1.442695, %v591_v19 }
 0x3d1   :  { %v1335_v22 = vpop.eup %1334 }
 0x3d2   :  { %1336 = vpow2.f32 %v594_v21  ;;  %v596_v24 = vsel %vm60_vm0, %v1335_v22, 0.0  ;;  %v503_v27 = vpop.f32.mrf.mxu1 }
 0x3d3   :  { %597 = vadd.xlane.f32.xlu2 %v596_v24  ;;  %v504_v28 = vadd.f32 %v503_v27, %v480_v23 }
 0x3d6   :  { %v1610_v41 = vpop.f32.mrf.mxu0 }
 0x3d8   :  { %v1337_v29 = vpop.eup %1336  ;;  %v536_v30 = vpop.f32.mrf.mxu2 }
 0x3d9   :  { %v1589_v31 = vadd.f32 %v536_v30, %v504_v28  ;;  %v599_v25 = vsel %vm60_vm0, %v1337_v29, 0.0 }
 0x3da   :  { %600 = vadd.xlane.f32.xlu0 %v599_v25  ;;  %v1643_v63 = vpop.f32.mrf.mxu1 }
 0x3ee   :  { %1007 = vrot.lane.b32.xlu0 %v1429_v26, %s1343_s21 }
 0x446   :  { %v598_v34 = vpop.xlane.xlu2 %597 }
 0x447   :  { %1338 = vrcp.f32 %v598_v34 }
 0x44d   :  { %v601_v4 = vpop.xlane.xlu0 %600  ;;  %v1339_v35 = vpop.eup %1338 }
 0x44e   :  { %1340 = vrcp.f32 %v601_v4  ;;  %v1599_v37 = vmul.f32 %v1339_v35, %v1335_v22  ;;  %v1312_v4 = vld [vmem:[%s1758_s8 + $0x20] sm:$0xff]  ;;  %v1311_v35 = vld [vmem:[%s1758_s8 + $0x18] sm:$0xff] }
 0x44f   :  { %927 = vmatpush.bf16.msra.mxu3 %v1312_v4 }
 0x454   :  { %v1341_v36 = vpop.eup %1340 }
 0x455   :  { %v605_v38 = vmul.f32 %v1341_v36, %v1337_v29  ;;  %v1699_v36 = vpop.f32.mrf.mxu2 }
 0x457   :  { %1023 = vrot.lane.b32.xlu2 %v605_v38, %s1344_s26  ;;  %v606_v26 = vpack.c.bf16 %v605_v38, %v1599_v37 }
 0x459   :  { %1173 = vmatmul.msk.bf16.vlgmr.msrb.gmra.mxu0 %vm60_vm0, %v606_v26 }
 0x45a   :  { %950 = vmatpush.bf16.msrb.mxu0 %v1311_v35 }
 0x4d6   :  { %v636_v42 = vpop.f32.mrf.mxu0 }
 0x4de   :  { %v638_v43 = vpop.f32.mrf.mxu0 }
 0x4df   :  { %v641_v44 = vpack.c.bf16 %v638_v43, %v636_v42 }
 0x4e1   :  { %1187 = vmatmul.msk.bf16.vlgmr.msrb.gmra.mxu1 %vm60_vm0, %v641_v44 }
 0x4e2   :  { %983 = vmatpush.bf16.msrb.mxu1 %v1313_v20  ;;  %v1006_v20 = vpop.permute.xlu1 %1005 }
 0x55e   :  { %v676_v1 = vpop.f32.mrf.mxu1 }
 0x55f   :  { %v677_v2 = vadd.f32 %v1323_v0, %v676_v1 }
 0x561   :  { %v1649_v3 = vmul.f32 %v677_v2, %v1477_v47 }
 0x563   :  { %v695_v8 = vrot.slane %v1649_v3, 7  ;;  %v683_v9 = vrot.slane %v1649_v3, 6  ;;  %v802_v14 = vrot.slane %v1649_v3, 1  ;;  %v845_v30 = vrot.slane %v1649_v3, 2 }
 0x566   :  { %v678_v5 = vpop.f32.mrf.mxu1 }
 0x567   :  { %v679_v6 = vadd.f32 %v1323_v0, %v678_v5 }
 0x569   :  { %v1652_v7 = vmul.f32 %v679_v6, %v1494_v58 }
 0x56b   :  { %v765_v10 = vpack.c.bf16 %v1652_v7, %v1649_v3  ;;  %v696_v11 = vrot.slane %v1652_v7, 7  ;;  %v684_v12 = vrot.slane %v1652_v7, 6  ;;  %v803_v13 = vrot.slane %v1652_v7, 1 }
 0x56c   :  { %v846_v56 = vrot.slane %v1652_v7, 2 }
 0x56d   :  { %1226 = vmatmul.msk.bf16.vlgmr.msra.gmra.mxu0 %vm60_vm0, %v765_v10  ;;  %v697_v15 = vsel %vm210_vm1, %v695_v8, %v696_v11  ;;  %v698_v16 = vsel %vm210_vm1, %v696_v11, %v695_v8  ;;  %v685_v17 = vsel %vm186_vm2, %v683_v9, %v684_v12  ;;  %v686_v18 = vsel %vm186_vm2, %v684_v12, %v683_v9 }
 0x56e   :  { %v699_v19 = vsel %vm215_vm4, %v698_v16, 0.0  ;;  %v687_v21 = vsel %vm191_vm5, %v686_v18, 0.0  ;;  %v804_v22 = vsel %vm330_vm3, %v802_v14, %v803_v13  ;;  %v805_v23 = vsel %vm330_vm3, %v803_v13, %v802_v14 }
 0x56f   :  { %v701_v24 = vpack.c.bf16 %v697_v15, %v699_v19  ;;  %v689_v27 = vpack.c.bf16 %v685_v17, %v687_v21  ;;  %v807_v28 = vsel %vm338_vm6, %v805_v23, 0.0  ;;  %v848_v25 = vsel %vm386_vm7, %v846_v56, %v845_v30 }
 0x570   :  { %v808_v29 = vpack.c.bf16 %v807_v28, %v804_v22  ;;  %v847_v32 = vsel %vm386_vm7, %v845_v30, %v846_v56  ;;  %v850_v33 = vsel %vm394_vm8, %v848_v25, 0.0 }
 0x571   :  { %1204 = vmatmul.msk.bf16.vlgmr.msrb.gmra.mxu2 %vm60_vm0, %v701_v24  ;;  %1213 = vmatmul.msk.bf16.vlgmr.msrb.gmra.mxu3 %vm60_vm0, %v689_v27  ;;  %v851_v34 = vpack.c.bf16 %v850_v33, %v847_v32 }
 0x572   :  { %1239 = vmatmul.msk.bf16.vlgmr.msra.gmra.mxu1 %vm60_vm0, %v808_v29 }
 0x581   :  { %1252 = vmatmul.msk.bf16.vlgmr.msra.gmra.mxu2 %vm60_vm0, %v851_v34 }
 0x5ea   :  { %v795_v39 = vpop.f32.mrf.mxu0 }
 0x5ef   :  { %v838_v43 = vpop.f32.mrf.mxu1 }
 0x5f2   :  { %v797_v51 = vpop.f32.mrf.mxu0 }
 0x5f4   :  { %v731_v38 = vpop.f32.mrf.mxu2  ;;  %v760_v26 = vpop.f32.mrf.mxu3 }
 0x5f5   :  { %v761_v40 = vadd.f32 %v760_v26, %v731_v38  ;;  %v1322_v26 = vld [vmem:[%s1759_s9] ss:$0 sm:$0xff] }
 0x5f7   :  { %v800_v44 = vadd.f32 %v795_v39, %v761_v40  ;;  %v840_v61 = vpop.f32.mrf.mxu1  ;;  %v547_v40 = vadd.f32 %v1322_v26, %v1589_v31 }
 0x5f9   :  { %v843_v48 = vadd.f32 %v838_v43, %v800_v44  ;;  %v549_v44 = vadd.f32 %v547_v40, %v1486_v53 }
 0x5fc   :  { %v733_v42 = vpop.f32.mrf.mxu2  ;;  %v762_v45 = vpop.f32.mrf.mxu3 }
 0x5fd   :  { %v763_v46 = vadd.f32 %v762_v45, %v733_v42 }
 0x5ff   :  { %v801_v57 = vadd.f32 %v797_v51, %v763_v46 }
 0x601   :  { %v844_v0 = vadd.f32 %v840_v61, %v801_v57 }
 0x604   :  { %v881_v49 = vpop.f32.mrf.mxu2 }
 0x605   :  { %v886_v52 = vadd.f32 %v881_v49, %v843_v48  ;;  %v1024_v49 = vpop.permute.xlu2 %1023 }
 0x607   :  { %v893_v62 = vadd.f32 %v1324_v54, %v886_v52 }
 0x609   :  { %v895_v5 = vmax.f32 %v893_v62, 0.0 }
 0x60b   :  { %v897_v9 = vrot.slane %v895_v5, 7  ;;  %v957_v10 = vrot.slane %v895_v5, 1 }
 0x60c   :  { %v883_v1 = vpop.f32.mrf.mxu2 }
 0x60d   :  { %v887_v2 = vadd.f32 %v883_v1, %v844_v0 }
 0x60f   :  { %v894_v6 = vadd.f32 %v1324_v54, %v887_v2 }
 0x611   :  { %v896_v8 = vmax.f32 %v894_v6, 0.0 }
 0x613   :  { %v898_v11 = vrot.slane %v896_v8, 7  ;;  %v907_v12 = vpack.c.bf16 %v896_v8, %v895_v5  ;;  %v958_v13 = vrot.slane %v896_v8, 1 }
 0x615   :  { %v899_v14 = vsel %vm210_vm1, %v897_v9, %v898_v11  ;;  %v900_v15 = vsel %vm210_vm1, %v898_v11, %v897_v9  ;;  %v959_v16 = vsel %vm330_vm3, %v957_v10, %v958_v13  ;;  %v960_v17 = vsel %vm330_vm3, %v958_v13, %v957_v10  ;;  %1262 = vmatmul.msk.bf16.vlgmr.msra.gmra.mxu3 %vm467_vm9, %v907_v12 }
 0x616   :  { %v901_v18 = vsel %vm215_vm4, %v900_v15, 0.0  ;;  %v962_v19 = vsel %vm338_vm6, %v960_v17, 0.0 }
 0x617   :  { %v903_v21 = vpack.c.bf16 %v899_v14, %v901_v18  ;;  %v963_v22 = vpack.c.bf16 %v962_v19, %v959_v16 }
 0x619   :  { %1267 = vmatmul.msk.bf16.vlgmr.msrb.gmra.mxu0 %vm467_vm9, %v903_v21  ;;  %1274 = vmatmul.msk.bf16.vlgmr.msrb.gmra.mxu1 %vm467_vm9, %v963_v22 }
 0x696   :  { %v952_v23 = vpop.f32.mrf.mxu0  ;;  %v985_v24 = vpop.f32.mrf.mxu1 }
 0x698   :  { %v929_v27 = vpop.f32.mrf.mxu3 }
 0x699   :  { %v953_v28 = vadd.f32 %v952_v23, %v929_v27 }
 0x69b   :  { %v990_v29 = vadd.f32 %v985_v24, %v953_v28 }
 0x69d   :  { %v997_v55 = vadd.f32 %v1325_v50, %v990_v29 }
 0x69e   :  { %v954_v59 = vpop.f32.mrf.mxu0  ;;  %v987_v33 = vpop.f32.mrf.mxu1 }
 0x69f   :  { %v999_v56 = vadd.f32 %v997_v55, %v1649_v3  ;;  %v506_v3 = vadd.f32 %v1643_v63, %v1610_v41 }
 0x6a0   :  { %v931_v30 = vpop.f32.mrf.mxu3 }
 0x6a1   :  { %v955_v25 = vadd.f32 %v954_v59, %v931_v30  ;;  %v1001_v32 = vmul.f32 %v999_v56, %v1477_v47  ;;  %v542_v39 = vadd.f32 %v1699_v36, %v506_v3 }
 0x6a3   :  { %v991_v34 = vadd.f32 %v987_v33, %v955_v25  ;;  %1013 = vrot.lane.b32.xlu1 %v1001_v32, %s1345_s14  ;;  %v548_v42 = vadd.f32 %v1322_v26, %v542_v39 }
 0x6a5   :  { %v998_v4 = vadd.f32 %v1325_v50, %v991_v34  ;;  %v550_v45 = vadd.f32 %v548_v42, %v1499_v60 }
 0x6a7   :  { %v1000_v35 = vadd.f32 %v998_v4, %v1652_v7  ;;  %v1008_v7 = vpop.permute.xlu0 %1007  ;;  %v552_v41 = vmul.f32 %v550_v45, %v1494_v58 }
 0x6a9   :  { %v1002_v38 = vmul.f32 %v1000_v35, %v1494_v58  ;;  %v1028_v46 = vsel %vm60_vm0, %v552_v41, %v1008_v7 }
 0x6ab   :  { %1015 = vrot.lane.b32.xlu0 %v1002_v38, %s1345_s14  ;;  %1021 = vrot.lane.b32.xlu1 %v1599_v37, %s1344_s26  ;;  %v551_v37 = vmul.f32 %v549_v44, %v1477_v47 }
 0x6ad   :  { %v1027_v63 = vsel %vm60_vm0, %v551_v37, %v1006_v20 }
 0x715   :  { %v1014_v43 = vpop.permute.xlu1 %1013 }
 0x716   :  { %v1030_v36 = vsel %vm1029_vm10, %v1027_v63, %v1014_v43 }
 0x71d   :  { %v1016_v48 = vpop.permute.xlu0 %1015  ;;  %v1022_v31 = vpop.permute.xlu1 %1021 }
 0x71e   :  { %v1031_v51 = vsel %vm1029_vm10, %v1028_v46, %v1016_v48  ;;  %v1033_v52 = vsel %vm1032_vm11, %v1030_v36, %v1022_v31 }
 0x71f   :  { %v1034_v54 = vsel %vm1032_vm11, %v1031_v51, %v1024_v49  ;;  %1035 = vst [vmem:[%s1760_s10] sm:$0xff] %v1033_v52 }
 0x720   :  { %1036 = vst [vmem:[%s1760_s10 + $0x8] sm:$0xff] %v1034_v54 }

</bundles_post_ra>
